<compile_context>
chip_gen: v5e
topology: v5e:2x2
jax: 0.10.0
libtpu: 0.0.40
codegen_flags: <defaults>
</compile_context>

<pallas_src>
import math
import jax
import jax.numpy as jnp
from jax.experimental import pallas as pl
from jax.experimental.pallas import tpu as pltpu


def ffn_kernel(x_ref, w1_ref, b1_ref, w2_ref, b2_ref, o_ref, acc_ref):
    k = pl.program_id(1)

    @pl.when(k == 0)
    def _init():
        acc_ref[...] = jnp.zeros_like(acc_ref)

    # First matmul: native-dtype operands on the MXU, f32 accumulation.
    h = jnp.dot(x_ref[...], w1_ref[...], preferred_element_type=jnp.float32)
    h = h + b1_ref[...].astype(jnp.float32)
    h = jnp.maximum(h, 0.0)  # ReLU in f32 on the accumulator path (v5e-safe)
    # TODO(synk): dropout is identity in eval mode; training-mode stochastic mask not implemented.

    # Second matmul: cast the activation back to the weight dtype (no-op for f32 inputs),
    # accumulate the partial d_ff contribution in the f32 scratch accumulator.
    acc_ref[...] += jnp.dot(h.astype(w2_ref.dtype), w2_ref[...],
                            preferred_element_type=jnp.float32)

    @pl.when(k == pl.num_programs(1) - 1)
    def _finalize():
        o_ref[...] = (acc_ref[...] + b2_ref[...].astype(jnp.float32)).astype(o_ref.dtype)


def _round_up(v, m):
    return ((v + m - 1) // m) * m


def _pad2d(a, rows, cols):
    r, c = a.shape
    if r == rows and c == cols:
        return a
    return jnp.pad(a, ((0, rows - r), (0, cols - c)))


def feed_forward(x, w1, b1, w2, b2, *, row_tile=256, ff_tile=512):
    """x: (..., d_model) -> (..., hidden_dim)."""
    *lead, d_model = x.shape
    d_ff = w1.shape[1]
    hidden = w2.shape[1]
    M = 1
    for d in lead:
        M *= d

    # Lane-align feature dims (multiples of 128); sublane-align / clamp the row tile.
    d_model_p = _round_up(d_model, 128)
    hidden_p = _round_up(hidden, 128)
    ff_tile = min(ff_tile, _round_up(d_ff, 128))
    d_ff_p = _round_up(d_ff, ff_tile)
    row_tile = min(row_tile, _round_up(M, 8))
    m_pad = _round_up(M, row_tile)

    x2 = _pad2d(x.reshape(M, d_model), m_pad, d_model_p)
    w1p = _pad2d(w1, d_model_p, d_ff_p)
    b1p = _pad2d(b1, 1, d_ff_p)
    w2p = _pad2d(w2, d_ff_p, hidden_p)
    b2p = _pad2d(b2, 1, hidden_p)

    grid = (m_pad // row_tile, d_ff_p // ff_tile)

    itemsize = jnp.dtype(x.dtype).itemsize
    # Double-buffered tiles + f32 accumulator + f32 intermediate, with headroom.
    vmem_est = (
        2 * row_tile * d_model_p      # x tile
        + 2 * d_model_p * ff_tile     # w1 tile
        + 2 * ff_tile                 # b1 tile
        + 2 * ff_tile * hidden_p      # w2 tile
        + 2 * hidden_p                # b2 tile
        + 2 * row_tile * hidden_p     # out tile
    ) * itemsize + row_tile * hidden_p * 4 + row_tile * ff_tile * 4
    vmem_limit = int(min(100 * 1024 * 1024,
                         max(32 * 1024 * 1024, int(vmem_est * 1.5) + (2 << 20))))

    cost = pl.CostEstimate(
        flops=2 * m_pad * (d_model_p * d_ff_p + d_ff_p * hidden_p),
        transcendentals=0,
        bytes_accessed=int((x2.size + w1p.size + b1p.size + w2p.size + b2p.size
                            + m_pad * hidden_p) * itemsize),
    )

    out = pl.pallas_call(
        ffn_kernel,
        out_shape=jax.ShapeDtypeStruct((m_pad, hidden_p), x.dtype),
        grid_spec=pltpu.PrefetchScalarGridSpec(
            num_scalar_prefetch=0,
            grid=grid,
            in_specs=[
                pl.BlockSpec((row_tile, d_model_p), lambda i, k: (i, 0)),
                pl.BlockSpec((d_model_p, ff_tile), lambda i, k: (0, k)),
                pl.BlockSpec((1, ff_tile), lambda i, k: (0, k)),
                pl.BlockSpec((ff_tile, hidden_p), lambda i, k: (k, 0)),
                pl.BlockSpec((1, hidden_p), lambda i, k: (0, 0)),
            ],
            out_specs=pl.BlockSpec((row_tile, hidden_p), lambda i, k: (i, 0)),
            scratch_shapes=[pltpu.VMEM((row_tile, hidden_p), jnp.float32)],
        ),
        compiler_params=pltpu.CompilerParams(
            dimension_semantics=("parallel", "arbitrary"),
            vmem_limit_bytes=vmem_limit,
        ),
        cost_estimate=cost,
    )(x2, w1p, b1p, w2p, b2p)

    return out[:M, :hidden].reshape(tuple(lead) + (hidden,))


def init_params(key, d_model, d_ff, hidden_dim, dtype=jnp.float32):
    """Deterministic init matching nn.Linear's default uniform(-1/sqrt(fan_in), +1/sqrt(fan_in))."""
    k1, k2, k3, k4 = jax.random.split(key, 4)
    bound1 = 1.0 / math.sqrt(d_model)
    bound2 = 1.0 / math.sqrt(d_ff)
    w1 = jax.random.uniform(k1, (d_model, d_ff), dtype, -bound1, bound1)
    b1 = jax.random.uniform(k2, (1, d_ff), dtype, -bound1, bound1)
    w2 = jax.random.uniform(k3, (d_ff, hidden_dim), dtype, -bound2, bound2)
    b2 = jax.random.uniform(k4, (1, hidden_dim), dtype, -bound2, bound2)
    return w1, b1, w2, b2


if __name__ == "__main__":
    key = jax.random.PRNGKey(0)
    kx, kp = jax.random.split(key)

    # FeedForward inside GALSTM sees (batch, seq, nodes, d_model) with hidden_dim = d_model.
    batch, seq, nodes, d_model = 2, 8, 4, 32
    d_ff = 64
    hidden_dim = d_model

    x = jax.random.normal(kx, (batch, seq, nodes, d_model), dtype=jnp.float32)
    w1, b1, w2, b2 = init_params(kp, d_model, d_ff, hidden_dim)

    out = feed_forward(x, w1, b1, w2, b2)
    jax.block_until_ready(out)

    # reference check in plain JAX
    ref = jnp.maximum(x @ w1 + b1[0], 0.0) @ w2 + b2[0]
    assert out.shape == (batch, seq, nodes, hidden_dim)
    assert jnp.allclose(out, ref, atol=1e-4, rtol=1e-4), float(jnp.max(jnp.abs(out - ref)))

    print("KERNEL_OK")
</pallas_src>

<mosaic_0001>
module attributes {stable_mosaic.version = 11 : i64} {
  func.func @ffn_kernel(%arg0: i32, %arg1: i32, %arg2: memref<64x128xf32, #tpu.memory_space<vmem>>, %arg3: memref<128x128xf32, #tpu.memory_space<vmem>>, %arg4: memref<1x128xf32, #tpu.memory_space<vmem>>, %arg5: memref<128x128xf32, #tpu.memory_space<vmem>>, %arg6: memref<1x128xf32, #tpu.memory_space<vmem>>, %arg7: memref<64x128xf32, #tpu.memory_space<vmem>>, %arg8: memref<64x128xf32, #tpu.memory_space<vmem>>) attributes {dimension_semantics = [#tpu.dimension_semantics<parallel>, #tpu.dimension_semantics<arbitrary>], iteration_bounds = array<i64: 1, 1>, scalar_prefetch = 0 : i64, scratch_operands = 1 : i64, tpu.core_type = #tpu.core_type<tc>, window_params = [{transform_indices = @transform_0, window_bounds = array<i64: 64, 128>}, {transform_indices = @transform_1, window_bounds = array<i64: 128, 128>}, {transform_indices = @transform_2, window_bounds = array<i64: 1, 128>}, {transform_indices = @transform_3, window_bounds = array<i64: 128, 128>}, {pipeline_mode = #tpu.pipeline_mode<synchronous>, transform_indices = @transform_4, window_bounds = array<i64: 1, 128>}, {transform_indices = @transform_5, window_bounds = array<i64: 64, 128>}]} {
    %c0_i32 = arith.constant 0 : i32
    %0 = arith.cmpi eq, %arg1, %c0_i32 : i32
    %1 = arith.extui %0 : i1 to i32
    %c0_i32_0 = arith.constant 0 : i32
    %2 = arith.cmpi ne, %1, %c0_i32_0 : i32
    scf.if %2 {
      %cst_16 = arith.constant 0.000000e+00 : f32
      %19 = vector.broadcast %cst_16 : f32 to vector<64x128xf32>
      %c0_17 = arith.constant 0 : index
      %c0_18 = arith.constant 0 : index
      %20 = vector.load %arg8[%c0_17, %c0_18] : memref<64x128xf32, #tpu.memory_space<vmem>>, vector<64x128xf32>
      tpu.vector_store %arg8[%c0_17, %c0_18], %19 {strides = array<i32>} : memref<64x128xf32, #tpu.memory_space<vmem>>, vector<64x128xf32>,
    } else {
    }
    %c0 = arith.constant 0 : index
    %c0_1 = arith.constant 0 : index
    %3 = vector.load %arg2[%c0, %c0_1] : memref<64x128xf32, #tpu.memory_space<vmem>>, vector<64x128xf32>
    %c0_2 = arith.constant 0 : index
    %c0_3 = arith.constant 0 : index
    %4 = vector.load %arg3[%c0_2, %c0_3] : memref<128x128xf32, #tpu.memory_space<vmem>>, vector<128x128xf32>
    %cst = arith.constant dense<0.000000e+00> : vector<64x128xf32>
    %5 = tpu.matmul %3, %4, %cst {dimension_numbers = #tpu.dot_dimension_numbers<[1], [0], [0], [1], [0, 0, 1, 1], [], []>} : vector<64x128xf32>, vector<128x128xf32>, vector<64x128xf32> -> vector<64x128xf32>
    %c0_4 = arith.constant 0 : index
    %c0_5 = arith.constant 0 : index
    %6 = vector.load %arg4[%c0_4, %c0_5] : memref<1x128xf32, #tpu.memory_space<vmem>>, vector<1x128xf32>
    %7 = vector.broadcast %6 : vector<1x128xf32> to vector<64x128xf32>
    %8 = arith.addf %5, %7 : vector<64x128xf32>
    %cst_6 = arith.constant 0.000000e+00 : f32
    %9 = vector.broadcast %cst_6 : f32 to vector<64x128xf32>
    %10 = arith.maximumf %8, %9 : vector<64x128xf32>
    %c0_7 = arith.constant 0 : index
    %c0_8 = arith.constant 0 : index
    %11 = vector.load %arg8[%c0_7, %c0_8] : memref<64x128xf32, #tpu.memory_space<vmem>>, vector<64x128xf32>
    %c0_9 = arith.constant 0 : index
    %c0_10 = arith.constant 0 : index
    %12 = vector.load %arg5[%c0_9, %c0_10] : memref<128x128xf32, #tpu.memory_space<vmem>>, vector<128x128xf32>
    %cst_11 = arith.constant dense<0.000000e+00> : vector<64x128xf32>
    %13 = tpu.matmul %10, %12, %cst_11 {dimension_numbers = #tpu.dot_dimension_numbers<[1], [0], [0], [1], [0, 0, 1, 1], [], []>} : vector<64x128xf32>, vector<128x128xf32>, vector<64x128xf32> -> vector<64x128xf32>
    %14 = arith.addf %11, %13 : vector<64x128xf32>
    %c0_12 = arith.constant 0 : index
    %c0_13 = arith.constant 0 : index
    %15 = vector.load %arg8[%c0_12, %c0_13] : memref<64x128xf32, #tpu.memory_space<vmem>>, vector<64x128xf32>
    tpu.vector_store %arg8[%c0_12, %c0_13], %14 {strides = array<i32>} : memref<64x128xf32, #tpu.memory_space<vmem>>, vector<64x128xf32>,
    %c0_i32_14 = arith.constant 0 : i32
    %16 = arith.cmpi eq, %arg1, %c0_i32_14 : i32
    %17 = arith.extui %16 : i1 to i32
    %c0_i32_15 = arith.constant 0 : i32
    %18 = arith.cmpi ne, %17, %c0_i32_15 : i32
    scf.if %18 {
      %c0_16 = arith.constant 0 : index
      %c0_17 = arith.constant 0 : index
      %19 = vector.load %arg8[%c0_16, %c0_17] : memref<64x128xf32, #tpu.memory_space<vmem>>, vector<64x128xf32>
      %c0_18 = arith.constant 0 : index
      %c0_19 = arith.constant 0 : index
      %20 = vector.load %arg6[%c0_18, %c0_19] : memref<1x128xf32, #tpu.memory_space<vmem>>, vector<1x128xf32>
      %21 = vector.broadcast %20 : vector<1x128xf32> to vector<64x128xf32>
      %22 = arith.addf %19, %21 : vector<64x128xf32>
      %c0_20 = arith.constant 0 : index
      %c0_21 = arith.constant 0 : index
      %23 = vector.load %arg7[%c0_20, %c0_21] : memref<64x128xf32, #tpu.memory_space<vmem>>, vector<64x128xf32>
      tpu.vector_store %arg7[%c0_20, %c0_21], %22 {strides = array<i32>} : memref<64x128xf32, #tpu.memory_space<vmem>>, vector<64x128xf32>,
    } else {
    }
    return
  }
  func.func @transform_0(%arg0: i32, %arg1: i32) -> (i32, i32) {
    %c0_i32 = arith.constant 0 : i32
    %c0_i32_0 = arith.constant 0 : i32
    return %arg0, %c0_i32 : i32, i32
  }
  func.func @transform_1(%arg0: i32, %arg1: i32) -> (i32, i32) {
    %c0_i32 = arith.constant 0 : i32
    %c0_i32_0 = arith.constant 0 : i32
    return %c0_i32, %arg1 : i32, i32
  }
  func.func @transform_2(%arg0: i32, %arg1: i32) -> (i32, i32) {
    %c0_i32 = arith.constant 0 : i32
    %c0_i32_0 = arith.constant 0 : i32
    return %c0_i32, %arg1 : i32, i32
  }
  func.func @transform_3(%arg0: i32, %arg1: i32) -> (i32, i32) {
    %c0_i32 = arith.constant 0 : i32
    %c0_i32_0 = arith.constant 0 : i32
    return %arg1, %c0_i32 : i32, i32
  }
  func.func @transform_4(%arg0: i32, %arg1: i32) -> (i32, i32) {
    %c0_i32 = arith.constant 0 : i32
    %c0_i32_0 = arith.constant 0 : i32
    %c0_i32_1 = arith.constant 0 : i32
    return %c0_i32, %c0_i32_0 : i32, i32
  }
  func.func @transform_5(%arg0: i32, %arg1: i32) -> (i32, i32) {
    %c0_i32 = arith.constant 0 : i32
    %c0_i32_0 = arith.constant 0 : i32
    return %arg0, %c0_i32 : i32, i32
  }
}

</mosaic_0001>

<bundles_post_ra>
// kernel: tpu_custom_call.1
= control target key start
LH: loop header
LB: loop body
LE: loop exit
PB: predicated region body
PF: predicated region fallthrough
CT: control target
= control target key end

     0   :  { %10 = vsyncpa [#allocation4], 0  ;;  %s497_s0 = inlined_call_operand.hbm [shape: f32[64,128], index: 0, kind: input, shape index: {}]   ;;  %s498_s1 = inlined_call_operand.hbm [shape: f32[128,128], index: 1, kind: input, shape index: {}]   ;;  %s499_s2 = inlined_call_operand.vmem [shape: f32[1,128], index: 2, kind: input, shape index: {}]   ;;  %s500_s3 = inlined_call_operand.hbm [shape: f32[128,128], index: 3, kind: input, shape index: {}]   ;;  %s501_s4 = inlined_call_operand.vmem [shape: f32[1,128], index: 4, kind: input, shape index: {}]   ;;  %s502_s5 = inlined_call_operand.hbm [shape: f32[64,128], index: 5, kind: output, shape index: {}]  }
   0x1   :  { %11 = vsyncpa [#allocation7], 0 }
   0x2   :  { %12 = vsyncpa [#allocation5], 0  ;;  %s30_s20 = sshll.u32 %s498_s1, 4  ;;  %s431_s21 = smov [#allocation6]   ;;  %s31_s20 = int_to_ptr.hbm [resolvable:$true] %s30_s20 }
   0x3   :  { %s32_s22 = sshll.u32 %s431_s21, 4  ;;  %s17_s25 = sshll.u32 %s497_s0, 4  ;;  %s33_s22 = int_to_ptr.vmem [resolvable:$true] %s32_s22  ;;  %s18_s25 = int_to_ptr.hbm [resolvable:$true] %s17_s25 }
   0x4   :  { %s432_s26 = smov 128   ;;  %s433_s27 = smov 8  }
   0x5   :  { %38 = dma.hbm_to_vmem [thread:$0]  %s31_s20, 2048, %s33_s22, [#allocation7], %s432_s26, %s432_s26, %s433_s27  }
   0x6   :  { %s434_s28 = smov [#allocation3]   ;;  %s45_s1 = sshll.u32 %s500_s3, 4  ;;  %s46_s1 = int_to_ptr.hbm [resolvable:$true] %s45_s1 }
   0x7   :  { %s19_s29 = sshll.u32 %s434_s28, 4  ;;  %s435_s0 = smov [#allocation8]   ;;  %s20_s29 = int_to_ptr.vmem [resolvable:$true] %s19_s29 }
   0x8   :  { %25 = dma.hbm_to_vmem [thread:$0]  %s18_s25, 1024, %s20_s29, [#allocation4], %s432_s26, %s432_s26, %s433_s27  }
   0x9   :  { %s47_s7 = sshll.u32 %s435_s0, 4  ;;  %s48_s7 = int_to_ptr.vmem [resolvable:$true] %s47_s7 }
   0xa   :  { %53 = dma.hbm_to_vmem [thread:$0]  %s46_s1, 2048, %s48_s7, [#allocation7], %s432_s26, %s432_s26, %s433_s27  }
   0xb   :  { %425 = dma.done.wait [#allocation4], 1024  }
   0xc   :  { %426 = vsyncadd [#allocation4], 4294966272 }
   0xd   :  { %427 = dma.done.wait [#allocation7], 4096  }
   0xe   :  { %428 = vsyncadd [#allocation7], 4294963200  ;;  %v103_v0 = vld [vmem:[#allocation6 + $0x78] sm:$0xff]  ;;  %v102_v1 = vld [vmem:[#allocation6 + $0x70] sm:$0xff]  ;;  %s275_s13 = sshll.u32 %s502_s5, 4  ;;  %s276_s13 = int_to_ptr.hbm [resolvable:$true] %s275_s13 }
   0xf   :  { %289 = vmatpush.msra.mxu2 %v103_v0  ;;  %108 = vmatpush.msra.mxu0 %v103_v0  ;;  %v101_v2 = vld [vmem:[#allocation6 + $0x68] sm:$0xff]  ;;  %v100_v3 = vld [vmem:[#allocation6 + $0x60] sm:$0xff]  ;;  %v99_v4 = vld [vmem:[#allocation6 + $0x58] sm:$0xff] }
  0x10   :  { %v98_v5 = vld [vmem:[#allocation6 + $0x50] sm:$0xff]  ;;  %v97_v6 = vld [vmem:[#allocation6 + $0x48] sm:$0xff]  ;;  %v96_v7 = vld [vmem:[#allocation6 + $0x40] sm:$0xff] }
  0x11   :  { %290 = vmatpush.msra.mxu2 %v102_v1  ;;  %109 = vmatpush.msra.mxu0 %v102_v1  ;;  %v95_v8 = vld [vmem:[#allocation6 + $0x38] sm:$0xff]  ;;  %v94_v9 = vld [vmem:[#allocation6 + $0x30] sm:$0xff]  ;;  %v93_v10 = vld [vmem:[#allocation6 + $0x28] sm:$0xff] }
  0x12   :  { %v92_v11 = vld [vmem:[#allocation6 + $0x20] sm:$0xff]  ;;  %v91_v12 = vld [vmem:[#allocation6 + $0x18] sm:$0xff]  ;;  %v90_v13 = vld [vmem:[#allocation6 + $0x10] sm:$0xff] }
  0x13   :  { %291 = vmatpush.msra.mxu2 %v101_v2  ;;  %110 = vmatpush.msra.mxu0 %v101_v2  ;;  %v180_v14 = vld [vmem:[#allocation8 + $0x78] sm:$0xff]  ;;  %v179_v15 = vld [vmem:[#allocation8 + $0x70] sm:$0xff]  ;;  %v89_v16 = vld [vmem:[#allocation6 + $0x8] sm:$0xff] }
  0x14   :  { %305 = vmatpush.msra.mxu3 %v180_v14  ;;  %181 = vmatpush.msra.mxu1 %v180_v14  ;;  %v178_v17 = vld [vmem:[#allocation8 + $0x68] sm:$0xff]  ;;  %v88_v18 = vld [vmem:[#allocation6] sm:$0xff]  ;;  %v176_v22 = vld [vmem:[#allocation8 + $0x58] sm:$0xff] }
  0x15   :  { %292 = vmatpush.msra.mxu2 %v100_v3  ;;  %111 = vmatpush.msra.mxu0 %v100_v3  ;;  %v84_v19 = vld [vmem:[#allocation3 + $0x20] sm:$0xff]  ;;  %v175_v23 = vld [vmem:[#allocation8 + $0x50] sm:$0xff]  ;;  %v174_v24 = vld [vmem:[#allocation8 + $0x48] sm:$0xff] }
  0x16   :  { %306 = vmatpush.msra.mxu3 %v179_v15  ;;  %182 = vmatpush.msra.mxu1 %v179_v15  ;;  %v80_v20 = vld [vmem:[#allocation3] sm:$0xff]  ;;  %v85_v25 = vld [vmem:[#allocation3 + $0x28] sm:$0xff]  ;;  %v172_v28 = vld [vmem:[#allocation8 + $0x38] sm:$0xff] }
  0x17   :  { %293 = vmatpush.msra.mxu2 %v99_v4  ;;  %112 = vmatpush.msra.mxu0 %v99_v4  ;;  %v177_v21 = vld [vmem:[#allocation8 + $0x60] sm:$0xff]  ;;  %v81_v26 = vld [vmem:[#allocation3 + $0x8] sm:$0xff]  ;;  %v171_v29 = vld [vmem:[#allocation8 + $0x30] sm:$0xff] }
  0x18   :  { %307 = vmatpush.msra.mxu3 %v178_v17  ;;  %183 = vmatpush.msra.mxu1 %v178_v17  ;;  %v173_v27 = vld [vmem:[#allocation8 + $0x40] sm:$0xff]  ;;  %v170_v30 = vld [vmem:[#allocation8 + $0x28] sm:$0xff]  ;;  %v86_v31 = vld [vmem:[#allocation3 + $0x30] sm:$0xff] }
  0x19   :  { %294 = vmatpush.msra.mxu2 %v98_v5  ;;  %113 = vmatpush.msra.mxu0 %v98_v5  ;;  %v82_v32 = vld [vmem:[#allocation3 + $0x10] sm:$0xff]  ;;  %v169_v33 = vld [vmem:[#allocation8 + $0x20] sm:$0xff]  ;;  %v168_v34 = vld [vmem:[#allocation8 + $0x18] sm:$0xff] }
  0x1a   :  { %308 = vmatpush.msra.mxu3 %v177_v21  ;;  %184 = vmatpush.msra.mxu1 %v177_v21  ;;  %v87_v35 = vld [vmem:[#allocation3 + $0x38] sm:$0xff]  ;;  %v167_v37 = vld [vmem:[#allocation8 + $0x10] sm:$0xff]  ;;  %v166_v38 = vld [vmem:[#allocation8 + $0x8] sm:$0xff] }
  0x1b   :  { %295 = vmatpush.msra.mxu2 %v97_v6  ;;  %114 = vmatpush.msra.mxu0 %v97_v6  ;;  %v83_v36 = vld [vmem:[#allocation3 + $0x18] sm:$0xff]  ;;  %v165_v39 = vld [vmem:[#allocation8] sm:$0xff] }
  0x1c   :  { %309 = vmatpush.msra.mxu3 %v176_v22  ;;  %185 = vmatpush.msra.mxu1 %v176_v22  ;;  %v327_v40 = vld [vmem:[%s499_s2] ss:$0 sm:$0xff] }
  0x1d   :  { %296 = vmatpush.msra.mxu2 %v96_v7  ;;  %115 = vmatpush.msra.mxu0 %v96_v7  ;;  %v328_v1 = vld [vmem:[%s501_s4] ss:$0 sm:$0xff]  ;;  %s436_s4 = smov [#allocation9]  }
  0x1e   :  { %310 = vmatpush.msra.mxu3 %v175_v23  ;;  %186 = vmatpush.msra.mxu1 %v175_v23  ;;  %s273_s10 = sshll.u32 %s436_s4, 4  ;;  %s274_s10 = int_to_ptr.vmem [resolvable:$true] %s273_s10 }
  0x1f   :  { %297 = vmatpush.msra.mxu2 %v95_v8  ;;  %116 = vmatpush.msra.mxu0 %v95_v8 }
  0x20   :  { %311 = vmatpush.msra.mxu3 %v174_v24  ;;  %187 = vmatpush.msra.mxu1 %v174_v24 }
  0x21   :  { %298 = vmatpush.msra.mxu2 %v94_v9  ;;  %117 = vmatpush.msra.mxu0 %v94_v9 }
  0x22   :  { %312 = vmatpush.msra.mxu3 %v173_v27  ;;  %188 = vmatpush.msra.mxu1 %v173_v27 }
  0x23   :  { %299 = vmatpush.msra.mxu2 %v93_v10  ;;  %118 = vmatpush.msra.mxu0 %v93_v10 }
  0x24   :  { %313 = vmatpush.msra.mxu3 %v172_v28  ;;  %189 = vmatpush.msra.mxu1 %v172_v28 }
  0x25   :  { %300 = vmatpush.msra.mxu2 %v92_v11  ;;  %119 = vmatpush.msra.mxu0 %v92_v11 }
  0x26   :  { %314 = vmatpush.msra.mxu3 %v171_v29  ;;  %190 = vmatpush.msra.mxu1 %v171_v29 }
  0x27   :  { %301 = vmatpush.msra.mxu2 %v91_v12  ;;  %120 = vmatpush.msra.mxu0 %v91_v12 }
  0x28   :  { %315 = vmatpush.msra.mxu3 %v170_v30  ;;  %191 = vmatpush.msra.mxu1 %v170_v30 }
  0x29   :  { %302 = vmatpush.msra.mxu2 %v90_v13  ;;  %121 = vmatpush.msra.mxu0 %v90_v13 }
  0x2a   :  { %316 = vmatpush.msra.mxu3 %v169_v33  ;;  %192 = vmatpush.msra.mxu1 %v169_v33 }
  0x2b   :  { %303 = vmatpush.msra.mxu2 %v89_v16  ;;  %122 = vmatpush.msra.mxu0 %v89_v16 }
  0x2c   :  { %317 = vmatpush.msra.mxu3 %v168_v34  ;;  %193 = vmatpush.msra.mxu1 %v168_v34 }
  0x2d   :  { %304 = vmatpush.msra.mxu2 %v88_v18  ;;  %123 = vmatpush.msra.mxu0 %v88_v18 }
  0x2e   :  { %136 = vmatmul.f32.vlgmr.msra.gmra.mxu2 %v84_v19  ;;  %124 = vmatmul.f32.vlgmr.msra.gmra.mxu0 %v80_v20 }
  0x2f   :  { %318 = vmatpush.msra.mxu3 %v167_v37  ;;  %194 = vmatpush.msra.mxu1 %v167_v37 }
  0x31   :  { %319 = vmatpush.msra.mxu3 %v166_v38  ;;  %195 = vmatpush.msra.mxu1 %v166_v38 }
  0x33   :  { %320 = vmatpush.msra.mxu3 %v165_v39  ;;  %196 = vmatpush.msra.mxu1 %v165_v39 }
  0x36   :  { %139 = vmatmul.f32.gmra.mxu2 %v85_v25  ;;  %127 = vmatmul.f32.gmra.mxu0 %v81_v26 }
  0x3e   :  { %142 = vmatmul.f32.gmra.mxu2 %v86_v31  ;;  %130 = vmatmul.f32.gmra.mxu0 %v82_v32 }
  0x46   :  { %145 = vmatmul.f32.gmra.mxu2 %v87_v35  ;;  %133 = vmatmul.f32.gmra.mxu0 %v83_v36 }
  0xab   :  { %v125_v41 = vpop.f32.mrf.mxu0 }
  0xac   :  { %v126_v42 = vadd.f32 %v327_v40, %v125_v41 }
  0xae   :  { %v149_v43 = vmax.f32 %v126_v42, 0.0 }
  0xb0   :  { %197 = vmatmul.f32.vlgmr.msra.gmra.mxu1 %v149_v43 }
  0xb1   :  { %v137_v44 = vpop.f32.mrf.mxu2 }
  0xb2   :  { %v138_v45 = vadd.f32 %v327_v40, %v137_v44 }
  0xb3   :  { %v128_v46 = vpop.f32.mrf.mxu0 }
  0xb4   :  { %v153_v47 = vmax.f32 %v138_v45, 0.0  ;;  %v129_v48 = vadd.f32 %v327_v40, %v128_v46 }
  0xb6   :  { %209 = vmatmul.f32.vlgmr.msra.gmra.mxu3 %v153_v47  ;;  %v150_v49 = vmax.f32 %v129_v48, 0.0 }
  0xb8   :  { %200 = vmatmul.f32.gmra.mxu1 %v150_v49 }
  0xb9   :  { %v140_v50 = vpop.f32.mrf.mxu2 }
  0xba   :  { %v141_v51 = vadd.f32 %v327_v40, %v140_v50 }
  0xbb   :  { %v131_v52 = vpop.f32.mrf.mxu0 }
  0xbc   :  { %v154_v53 = vmax.f32 %v141_v51, 0.0  ;;  %v132_v54 = vadd.f32 %v327_v40, %v131_v52 }
  0xbe   :  { %212 = vmatmul.f32.gmra.mxu3 %v154_v53  ;;  %v151_v55 = vmax.f32 %v132_v54, 0.0 }
  0xc0   :  { %203 = vmatmul.f32.gmra.mxu1 %v151_v55 }
  0xc1   :  { %v143_v56 = vpop.f32.mrf.mxu2 }
  0xc2   :  { %v144_v57 = vadd.f32 %v327_v40, %v143_v56 }
  0xc3   :  { %v134_v58 = vpop.f32.mrf.mxu0 }
  0xc4   :  { %v155_v59 = vmax.f32 %v144_v57, 0.0  ;;  %v135_v60 = vadd.f32 %v327_v40, %v134_v58 }
  0xc6   :  { %215 = vmatmul.f32.gmra.mxu3 %v155_v59  ;;  %v152_v61 = vmax.f32 %v135_v60, 0.0 }
  0xc8   :  { %206 = vmatmul.f32.gmra.mxu1 %v152_v61 }
  0xc9   :  { %v146_v62 = vpop.f32.mrf.mxu2 }
  0xca   :  { %v147_v63 = vadd.f32 %v327_v40, %v146_v62 }
  0xcc   :  { %v156_v0 = vmax.f32 %v147_v63, 0.0 }
  0xce   :  { %218 = vmatmul.f32.gmra.mxu3 %v156_v0 }
 0x12d   :  { %v198_v2 = vpop.f32.mrf.mxu1 }
 0x12e   :  { %v253_v3 = vadd.f32 %v328_v1, %v198_v2 }
 0x130   :  { %261 = vst [vmem:[#allocation9] sm:$0xff] %v253_v3 }
 0x135   :  { %v201_v4 = vpop.f32.mrf.mxu1 }
 0x136   :  { %v254_v5 = vadd.f32 %v328_v1, %v201_v4 }
 0x138   :  { %262 = vst [vmem:[#allocation9 + $0x8] sm:$0xff] %v254_v5 }
 0x139   :  { %v210_v6 = vpop.f32.mrf.mxu3 }
 0x13a   :  { %v257_v7 = vadd.f32 %v328_v1, %v210_v6 }
 0x13c   :  { %265 = vst [vmem:[#allocation9 + $0x20] sm:$0xff] %v257_v7 }
 0x13d   :  { %v204_v8 = vpop.f32.mrf.mxu1 }
 0x13e   :  { %v255_v9 = vadd.f32 %v328_v1, %v204_v8 }
 0x140   :  { %263 = vst [vmem:[#allocation9 + $0x10] sm:$0xff] %v255_v9 }
 0x141   :  { %v213_v10 = vpop.f32.mrf.mxu3 }
 0x142   :  { %v258_v11 = vadd.f32 %v328_v1, %v213_v10 }
 0x144   :  { %266 = vst [vmem:[#allocation9 + $0x28] sm:$0xff] %v258_v11 }
 0x145   :  { %v207_v12 = vpop.f32.mrf.mxu1 }
 0x146   :  { %v256_v13 = vadd.f32 %v328_v1, %v207_v12 }
 0x148   :  { %264 = vst [vmem:[#allocation9 + $0x18] sm:$0xff] %v256_v13 }
 0x149   :  { %v216_v14 = vpop.f32.mrf.mxu3 }
 0x14a   :  { %v259_v15 = vadd.f32 %v328_v1, %v216_v14 }
 0x14c   :  { %267 = vst [vmem:[#allocation9 + $0x30] sm:$0xff] %v259_v15 }
 0x151   :  { %v219_v16 = vpop.f32.mrf.mxu3 }
 0x152   :  { %v260_v17 = vadd.f32 %v328_v1, %v219_v16 }
 0x154   :  { %268 = vst [vmem:[#allocation9 + $0x38] sm:$0xff] %v260_v17 }
 0x155   :  { %281 = dma.vmem_to_hbm [thread:$0]  %s274_s10, 1024, %s276_s13, [#allocation5], %s432_s26, %s432_s26, %s433_s27  }
 0x156   :  { %429 = dma.done.wait [#allocation5], 1024  }
 0x157   :  { %430 = vsyncadd [#allocation5], 4294966272 }
 0x158   :  { %286 = vsyncpa [#allocation4], 1 }
 0x159   :  { %287 = vsyncpa [#allocation7], 1 }
 0x15a   :  { %288 = vsyncpa [#allocation5], 1 }

</bundles_post_ra>
